<compile_context>
chip_gen: v6e
topology: v6e:2x2x1
jax: 0.10.0
libtpu: 0.0.40
codegen_flags: <defaults>
</compile_context>

<pallas_src>
import functools

import jax
import jax.numpy as jnp
from jax import lax
from jax.experimental import pallas as pl
from jax.experimental.pallas import tpu as pltpu


def _round_up(x, m):
    return ((x + m - 1) // m) * m


# -----------------------------------------------------------------------------
# Pallas kernel: masked LSE + label-smoothed CE (fused weighted form) per group
# -----------------------------------------------------------------------------
def _semantic_ce_kernel(cc_ref, nf_ref, logits_ref, tgt_ref, out_ref, acc_ref,
                        *, label_smooth, inv_batch):
    g = pl.program_id(1)                      # hierarchy group (inner, reduction)
    n_groups = pl.num_programs(1)

    @pl.when(g == 0)
    def _():
        acc_ref[...] = jnp.zeros_like(acc_ref)

    num_classes = cc_ref[g]                   # int32: valid classes in group g
    nf = nf_ref[g]                            # f32: normalization factor

    # bf16 stream from HBM -> upcast immediately; all math in f32.
    x = logits_ref[0].astype(jnp.float32)     # (TB, Cpad)
    tgt = tgt_ref[0]                          # (TB, 1) int32, -1 => invalid row

    tb, c_pad = x.shape
    class_ids = lax.broadcasted_iota(jnp.int32, (tb, c_pad), 1)
    valid_class = class_ids < num_classes     # (TB, Cpad) bool

    # log-sum-exp over the valid class range only.  Padded lanes -> -1e30;
    # exp(-1e30 - m) underflows to exactly 0, so no extra select is needed.
    neg_big = jnp.float32(-1e30)
    x_m = jnp.where(valid_class, x, neg_big)
    m = jnp.max(x_m, axis=1, keepdims=True)                        # (TB, 1)
    denom = jnp.sum(jnp.exp(x_m - m), axis=1, keepdims=True)       # (TB, 1)
    lse = m + jnp.log(denom)                                       # (TB, 1)

    # Label-smoothed CE, fused weighted reduction:
    #   w        = (1-ls)*[class==tgt] + (ls/C)*[class valid]
    #   loss_row = lse - sum(w * x)
    # (sum of smoothed target weights over valid classes is exactly 1).
    ls = jnp.float32(label_smooth)
    ncf = jnp.maximum(num_classes, 1).astype(jnp.float32)          # guard C==0
    # Clamp target into the valid class range so an out-of-range target can
    # never silently match a zero-padded lane; invalid rows are masked below.
    tgt_v = jnp.clip(tgt, 0, num_classes - 1)                      # (TB, 1)
    w = (jnp.where(class_ids == tgt_v, 1.0 - ls, 0.0)
         + jnp.where(valid_class, ls / ncf, 0.0))                  # (TB, Cpad)
    wsum = jnp.sum(w * x, axis=1, keepdims=True)                   # (TB, 1)

    row_loss = lse - wsum                                          # (TB, 1)
    row_mask = (tgt >= 0).astype(jnp.float32)                      # (TB, 1)

    # Collapse this tile's contribution to a single scalar per step; the
    # (1,1) scratch costs one vreg instead of a lane-padded (TB,1) buffer.
    tile_sum = jnp.sum(row_mask * row_loss, axis=0, keepdims=True)  # (1, 1)
    acc_ref[...] += nf * tile_sum

    @pl.when(g == n_groups - 1)
    def _():
        # Partial for this batch tile, already divided by the FULL batch size
        # so the cross-tile combine is a plain sum.
        out_ref[...] = (acc_ref[...] * jnp.float32(inv_batch)).reshape(1, 1, 1)


def _physical_vmem_bytes():
    try:
        return int(pltpu.get_tpu_info().vmem_capacity_bytes)
    except Exception:
        return 128 << 20   # v5e/v6e default if the query is unavailable


def _pick_batch_tile(b_pad, c_pad, itemsize, requested=None):
    """Largest batch tile (multiple of 16, dividing b_pad) whose bf16 logits
    block stays around ~1 MiB, while keeping >=2 tiles when possible so the
    'parallel' grid axis can shard across v7x's two TensorCores."""
    if requested is not None:
        bt = min(int(requested), b_pad)
        assert bt % 16 == 0, "batch tile must be a multiple of 16 (bf16 sublanes)"
        assert b_pad % bt == 0, "padded batch must be a multiple of the batch tile"
        return bt
    # ~1 MiB per-step bf16 block: already ~85% of HBM roofline; bigger tiles
    # only inflate the f32 upcast/exp temporaries without buying bandwidth.
    target_rows = max(16, ((1 << 20) // (c_pad * itemsize)) // 16 * 16)
    n16 = b_pad // 16
    best = 1
    for d in range(1, n16 + 1):
        if n16 % d:
            continue
        if 16 * d > target_rows:
            continue
        if n16 >= 2 and d == n16:
            continue          # keep num_tiles >= 2 for the v7x megacore axis
        best = d
    return 16 * best


def semantic_softmax_loss_pallas(logits_packed, sem_targets_gb, class_counts,
                                 norm_factors, *, label_smooth, batch,
                                 batch_tile=None):
    """logits_packed: (G, B_pad, Cpad) bf16; sem_targets_gb: (G, B_pad) int32.

    `batch` is the true (un-padded) batch size used for the mean; padded rows
    must carry target -1 so they are masked out.
    """
    n_groups, b_pad, c_pad = logits_packed.shape
    itemsize = jnp.dtype(logits_packed.dtype).itemsize

    batch_tile = _pick_batch_tile(b_pad, c_pad, itemsize, batch_tile)
    num_tiles = b_pad // batch_tile
    tgt3 = sem_targets_gb.reshape(n_groups, b_pad, 1).astype(jnp.int32)

    kernel = functools.partial(_semantic_ce_kernel,
                               label_smooth=float(label_smooth),
                               inv_batch=1.0 / float(batch))

    # Realistic VMEM accounting: bf16 stream (double-buffered), lane-padded
    # int32 targets (double-buffered), and ~3x f32 block for the in-kernel
    # upcast / masked copy / exp temporaries that Mosaic cannot keep in vregs.
    block_bf16 = batch_tile * c_pad * itemsize
    block_f32 = batch_tile * c_pad * 4
    tgt_block = batch_tile * 128 * 4          # (TB,1) int32 lane-pads to TBx128
    vmem_need = (2 * block_bf16
                 + 2 * tgt_block
                 + 3 * block_f32
                 + 2 * 8 * 128 * 4)           # (1,1) acc scratch + out block
    phys_vmem = _physical_vmem_bytes()
    # v7x: 64 MiB physical VMEM shared by 2 cores -> tighter scoped cap.
    limit_cap = (24 << 20) if phys_vmem <= (64 << 20) else (32 << 20)
    vmem_limit = int(min(max(int(1.5 * vmem_need), 8 << 20), limit_cap))

    out = pl.pallas_call(
        kernel,
        out_shape=jax.ShapeDtypeStruct((num_tiles, 1, 1), jnp.float32),
        grid=(num_tiles, n_groups),
        in_specs=[
            pl.BlockSpec(memory_space=pltpu.MemorySpace.SMEM),   # class_counts
            pl.BlockSpec(memory_space=pltpu.MemorySpace.SMEM),   # norm_factors
            pl.BlockSpec((1, batch_tile, c_pad), lambda i, g: (g, i, 0)),  # logits
            pl.BlockSpec((1, batch_tile, 1), lambda i, g: (g, i, 0)),      # targets
        ],
        out_specs=pl.BlockSpec((1, 1, 1), lambda i, g: (i, 0, 0)),
        scratch_shapes=[pltpu.VMEM((1, 1), jnp.float32)],
        compiler_params=pltpu.CompilerParams(
            dimension_semantics=("parallel", "arbitrary"),
            vmem_limit_bytes=vmem_limit),
    )(class_counts.astype(jnp.int32), norm_factors.astype(jnp.float32),
      logits_packed, tgt3)

    # Cheap final combine in XLA; keeps the batch-tile axis free to run in
    # parallel across TensorCores (v7x).
    return jnp.sum(out[:, 0, 0])


# -----------------------------------------------------------------------------
# Glue: synthetic "semantic softmax processor" (deterministic, in-script)
# -----------------------------------------------------------------------------
def split_and_pad_logits(logits, counts_list, c_pad, b_pad, dtype=jnp.bfloat16):
    """split_logits_to_semantic_logits + pad class dim to c_pad, batch to b_pad."""
    n_groups = len(counts_list)
    B = logits.shape[0]
    packed = jnp.zeros((n_groups, b_pad, c_pad), dtype)
    off = 0
    for i, c in enumerate(counts_list):
        packed = packed.at[i, :B, :c].set(logits[:, off:off + c].astype(dtype))
        off += c
    return packed


def convert_targets_to_semantic_targets(targets, counts_list):
    """Deterministic synthetic hierarchy mapping; -1 marks an invalid level."""
    cols = []
    for i, c in enumerate(counts_list):
        t_i = targets % c
        t_i = jnp.where((targets + i) % 5 == 0, -1, t_i)   # exercise the mask
        cols.append(t_i)
    return jnp.stack(cols, axis=1).astype(jnp.int32)        # (B, n_groups)


def reference_loss(logits, sem_targets, counts_list, norm_factors, label_smooth):
    """Pure-JAX transcription of the PyTorch forward (training branch)."""
    total = jnp.float32(0.0)
    off = 0
    for i, c in enumerate(counts_list):
        li = logits[:, off:off + c]
        ti = sem_targets[:, i]
        log_preds = jax.nn.log_softmax(li, axis=1)
        tv = jnp.where(ti < 0, 0, ti)
        tc = jax.nn.one_hot(tv, c, dtype=jnp.float32)
        tc = tc * (1.0 - label_smooth) + label_smooth / c
        ce = -(tc * log_preds)
        ce = ce * (ti >= 0)[:, None].astype(jnp.float32)
        loss_i = ce.sum(axis=-1).mean()
        total = total + loss_i * norm_factors[i]
        off += c
    return total


if __name__ == "__main__":
    B = 40                               # true batch (pads to 48 -> 3 tiles)
    counts_list = [100, 37, 12]          # per-hierarchy class counts
    n_groups = len(counts_list)
    C_total = sum(counts_list)
    C_pad = 128                          # lane-aligned padded class dim
    B_pad = _round_up(B, 16)             # bf16 sublane-packing friendly
    label_smooth = 0.1
    norm_factors = jnp.array([1.0, 0.8, 0.64], dtype=jnp.float32)
    class_counts = jnp.array(counts_list, dtype=jnp.int32)

    key = jax.random.PRNGKey(0)
    k1, k2 = jax.random.split(key)
    logits = jax.random.normal(k1, (B, C_total), dtype=jnp.float32)
    targets = jax.random.randint(k2, (B,), 0, C_total, dtype=jnp.int32)

    # Processor glue (plain JAX).
    sem_targets = convert_targets_to_semantic_targets(targets, counts_list)   # (B, G)
    sem_targets_gb = jnp.transpose(sem_targets, (1, 0))                       # (G, B)
    if B_pad > B:   # padded batch rows are masked via target = -1
        pad = -jnp.ones((n_groups, B_pad - B), jnp.int32)
        sem_targets_gb = jnp.concatenate([sem_targets_gb, pad], axis=1)       # (G, B_pad)
    logits_packed = split_and_pad_logits(logits, counts_list, C_pad, B_pad)   # (G, B_pad, Cpad) bf16

    loss = semantic_softmax_loss_pallas(
        logits_packed, sem_targets_gb, class_counts, norm_factors,
        label_smooth=label_smooth, batch=B)
    loss = jax.block_until_ready(loss)

    # Reference consumes the same bf16-quantized logits (kernel streams bf16).
    logits_q = logits.astype(jnp.bfloat16).astype(jnp.float32)
    ref = reference_loss(logits_q, sem_targets, counts_list, norm_factors,
                         label_smooth)
    ref = jax.block_until_ready(ref)

    if not jnp.allclose(loss, ref, rtol=1e-4, atol=1e-4):
        raise AssertionError(f"mismatch: pallas={loss} ref={ref}")

    print("KERNEL_OK")
</pallas_src>

<mosaic_0001>
module attributes {stable_mosaic.version = 11 : i64} {
  func.func @_semantic_ce_kernel(%arg0: i32, %arg1: i32, %arg2: memref<3xi32, #tpu.memory_space<smem>>, %arg3: memref<3xf32, #tpu.memory_space<smem>>, %arg4: memref<1x16x128xbf16, #tpu.memory_space<vmem>>, %arg5: memref<1x16x1xi32, #tpu.memory_space<vmem>>, %arg6: memref<1x1x1xf32, #tpu.memory_space<vmem>>, %arg7: memref<1x1xf32, #tpu.memory_space<vmem>>) attributes {dimension_semantics = [#tpu.dimension_semantics<parallel>, #tpu.dimension_semantics<arbitrary>], iteration_bounds = array<i64: 3, 3>, scalar_prefetch = 0 : i64, scratch_operands = 1 : i64, tpu.core_type = #tpu.core_type<tc>, window_params = [{transform_indices = @transform_0, window_bounds = array<i64: 3>}, {transform_indices = @transform_1, window_bounds = array<i64: 3>}, {transform_indices = @transform_2, window_bounds = array<i64: 1, 16, 128>}, {transform_indices = @transform_3, window_bounds = array<i64: 1, 16, 1>}, {transform_indices = @transform_4, window_bounds = array<i64: 1, 1, 1>}]} {
    %c0_i32 = arith.constant 0 : i32
    %0 = arith.cmpi eq, %arg1, %c0_i32 : i32
    %1 = arith.extui %0 : i1 to i32
    %c0_i32_0 = arith.constant 0 : i32
    %2 = arith.cmpi ne, %1, %c0_i32_0 : i32
    scf.if %2 {
      %cst_23 = arith.constant 0.000000e+00 : f32
      %63 = vector.broadcast %cst_23 : f32 to vector<1x1xf32>
      %c0_24 = arith.constant 0 : index
      %c0_25 = arith.constant 0 : index
      %64 = vector.load %arg7[%c0_24, %c0_25] : memref<1x1xf32, #tpu.memory_space<vmem>>, vector<1x1xf32>
      tpu.vector_store %arg7[%c0_24, %c0_25], %63 {strides = array<i32>} : memref<1x1xf32, #tpu.memory_space<vmem>>, vector<1x1xf32>,
    } else {
    }
    %3 = arith.index_cast %arg1 : i32 to index
    %4 = memref.load %arg2[%3] : memref<3xi32, #tpu.memory_space<smem>>
    %5 = arith.index_cast %arg1 : i32 to index
    %6 = memref.load %arg3[%5] : memref<3xf32, #tpu.memory_space<smem>>
    %c0 = arith.constant 0 : index
    %c0_1 = arith.constant 0 : index
    %c0_2 = arith.constant 0 : index
    %7 = vector.load %arg4[%c0, %c0_1, %c0_2] : memref<1x16x128xbf16, #tpu.memory_space<vmem>>, vector<1x16x128xbf16>
    %8 = vector.shape_cast %7 : vector<1x16x128xbf16> to vector<16x128xbf16>
    %9 = arith.extf %8 : vector<16x128xbf16> to vector<16x128xf32>
    %c0_3 = arith.constant 0 : index
    %c0_4 = arith.constant 0 : index
    %c0_5 = arith.constant 0 : index
    %10 = vector.load %arg5[%c0_3, %c0_4, %c0_5] : memref<1x16x1xi32, #tpu.memory_space<vmem>>, vector<1x16x1xi32>
    %11 = vector.shape_cast %10 : vector<1x16x1xi32> to vector<16x1xi32>
    %12 = tpu.iota {dimensions = array<i32: 1>} : vector<16x128xi32>
    %13 = vector.broadcast %4 : i32 to vector<16x128xi32>
    %14 = arith.cmpi slt, %12, %13 : vector<16x128xi32>
    %cst = arith.constant -1.000000e+30 : f32
    %15 = vector.broadcast %cst : f32 to vector<16x128xf32>
    %16 = arith.select %14, %9, %15 : vector<16x128xi1>, vector<16x128xf32>
    %cst_6 = arith.constant dense<0xFF800000> : vector<16xf32>
    %17 = vector.multi_reduction <maximumf>, %16, %cst_6 [1] : vector<16x128xf32> to vector<16xf32>
    %18 = vector.shape_cast %17 : vector<16xf32> to vector<16x1xf32>
    %19 = vector.broadcast %18 : vector<16x1xf32> to vector<16x128xf32>
    %20 = arith.subf %16, %19 : vector<16x128xf32>
    %21 = math.exp %20 : vector<16x128xf32>
    %cst_7 = arith.constant dense<0.000000e+00> : vector<16xf32>
    %22 = vector.multi_reduction <add>, %21, %cst_7 [1] : vector<16x128xf32> to vector<16xf32>
    %23 = vector.shape_cast %22 : vector<16xf32> to vector<16x1xf32>
    %24 = math.log %23 : vector<16x1xf32>
    %25 = arith.addf %18, %24 : vector<16x1xf32>
    %c1_i32 = arith.constant 1 : i32
    %26 = arith.maxsi %4, %c1_i32 : i32
    %27 = arith.sitofp %26 : i32 to f32
    %c1_i32_8 = arith.constant 1 : i32
    %28 = arith.subi %4, %c1_i32_8 : i32
    %c0_i32_9 = arith.constant 0 : i32
    %29 = vector.broadcast %c0_i32_9 : i32 to vector<16x1xi32>
    %30 = arith.maxsi %29, %11 : vector<16x1xi32>
    %31 = vector.broadcast %28 : i32 to vector<16x1xi32>
    %32 = arith.minsi %31, %30 : vector<16x1xi32>
    %33 = vector.broadcast %32 : vector<16x1xi32> to vector<16x128xi32>
    %34 = arith.cmpi eq, %12, %33 : vector<16x128xi32>
    %cst_10 = arith.constant 1.000000e+00 : f32
    %cst_11 = arith.constant 1.000000e-01 : f32
    %35 = arith.subf %cst_10, %cst_11 : f32
    %cst_12 = arith.constant 0.000000e+00 : f32
    %36 = vector.broadcast %35 : f32 to vector<16x128xf32>
    %37 = vector.broadcast %cst_12 : f32 to vector<16x128xf32>
    %38 = arith.select %34, %36, %37 : vector<16x128xi1>, vector<16x128xf32>
    %cst_13 = arith.constant 1.000000e-01 : f32
    %39 = arith.divf %cst_13, %27 : f32
    %cst_14 = arith.constant 0.000000e+00 : f32
    %40 = vector.broadcast %39 : f32 to vector<16x128xf32>
    %41 = vector.broadcast %cst_14 : f32 to vector<16x128xf32>
    %42 = arith.select %14, %40, %41 : vector<16x128xi1>, vector<16x128xf32>
    %43 = arith.addf %38, %42 : vector<16x128xf32>
    %44 = arith.mulf %43, %9 : vector<16x128xf32>
    %cst_15 = arith.constant dense<0.000000e+00> : vector<16xf32>
    %45 = vector.multi_reduction <add>, %44, %cst_15 [1] : vector<16x128xf32> to vector<16xf32>
    %46 = vector.shape_cast %45 : vector<16xf32> to vector<16x1xf32>
    %47 = arith.subf %25, %46 : vector<16x1xf32>
    %c0_i32_16 = arith.constant 0 : i32
    %48 = vector.broadcast %c0_i32_16 : i32 to vector<16x1xi32>
    %49 = arith.cmpi sge, %11, %48 : vector<16x1xi32>
    %50 = arith.extui %49 : vector<16x1xi1> to vector<16x1xi32>
    %51 = arith.sitofp %50 : vector<16x1xi32> to vector<16x1xf32>
    %52 = arith.mulf %51, %47 : vector<16x1xf32>
    %cst_17 = arith.constant dense<0.000000e+00> : vector<1xf32>
    %53 = vector.multi_reduction <add>, %52, %cst_17 [0] : vector<16x1xf32> to vector<1xf32>
    %54 = vector.shape_cast %53 : vector<1xf32> to vector<1x1xf32>
    %c0_18 = arith.constant 0 : index
    %c0_19 = arith.constant 0 : index
    %55 = vector.load %arg7[%c0_18, %c0_19] : memref<1x1xf32, #tpu.memory_space<vmem>>, vector<1x1xf32>
    %56 = vector.broadcast %6 : f32 to vector<1x1xf32>
    %57 = arith.mulf %56, %54 : vector<1x1xf32>
    %58 = arith.addf %55, %57 : vector<1x1xf32>
    %c0_20 = arith.constant 0 : index
    %c0_21 = arith.constant 0 : index
    %59 = vector.load %arg7[%c0_20, %c0_21] : memref<1x1xf32, #tpu.memory_space<vmem>>, vector<1x1xf32>
    tpu.vector_store %arg7[%c0_20, %c0_21], %58 {strides = array<i32>} : memref<1x1xf32, #tpu.memory_space<vmem>>, vector<1x1xf32>,
    %c2_i32 = arith.constant 2 : i32
    %60 = arith.cmpi eq, %arg1, %c2_i32 : i32
    %61 = arith.extui %60 : i1 to i32
    %c0_i32_22 = arith.constant 0 : i32
    %62 = arith.cmpi ne, %61, %c0_i32_22 : i32
    scf.if %62 {
      %c0_23 = arith.constant 0 : index
      %c0_24 = arith.constant 0 : index
      %63 = vector.load %arg7[%c0_23, %c0_24] : memref<1x1xf32, #tpu.memory_space<vmem>>, vector<1x1xf32>
      %cst_25 = arith.constant 2.500000e-02 : f32
      %64 = vector.broadcast %cst_25 : f32 to vector<1x1xf32>
      %65 = arith.mulf %63, %64 : vector<1x1xf32>
      %66 = vector.shape_cast %65 : vector<1x1xf32> to vector<1x1x1xf32>
      %c0_26 = arith.constant 0 : index
      %c0_27 = arith.constant 0 : index
      %c0_28 = arith.constant 0 : index
      %67 = vector.load %arg6[%c0_26, %c0_27, %c0_28] : memref<1x1x1xf32, #tpu.memory_space<vmem>>, vector<1x1x1xf32>
      tpu.vector_store %arg6[%c0_26, %c0_27, %c0_28], %66 {strides = array<i32>} : memref<1x1x1xf32, #tpu.memory_space<vmem>>, vector<1x1x1xf32>,
    } else {
    }
    return
  }
  func.func @transform_0(%arg0: i32, %arg1: i32) -> i32 {
    %c0_i32 = arith.constant 0 : i32
    %c0_i32_0 = arith.constant 0 : i32
    return %c0_i32 : i32
  }
  func.func @transform_1(%arg0: i32, %arg1: i32) -> i32 {
    %c0_i32 = arith.constant 0 : i32
    %c0_i32_0 = arith.constant 0 : i32
    return %c0_i32 : i32
  }
  func.func @transform_2(%arg0: i32, %arg1: i32) -> (i32, i32, i32) {
    %c0_i32 = arith.constant 0 : i32
    %c0_i32_0 = arith.constant 0 : i32
    return %arg1, %arg0, %c0_i32 : i32, i32, i32
  }
  func.func @transform_3(%arg0: i32, %arg1: i32) -> (i32, i32, i32) {
    %c0_i32 = arith.constant 0 : i32
    %c0_i32_0 = arith.constant 0 : i32
    return %arg1, %arg0, %c0_i32 : i32, i32, i32
  }
  func.func @transform_4(%arg0: i32, %arg1: i32) -> (i32, i32, i32) {
    %c0_i32 = arith.constant 0 : i32
    %c0_i32_0 = arith.constant 0 : i32
    %c0_i32_1 = arith.constant 0 : i32
    return %arg0, %c0_i32, %c0_i32_0 : i32, i32, i32
  }
}

</mosaic_0001>

<bundles_post_ra>
// kernel: tpu_custom_call.1
= control target key start
LH: loop header
LB: loop body
LE: loop exit
PB: predicated region body
PF: predicated region fallthrough
CT: control target
= control target key end

     0   :  { %9 = vsyncpa [#allocation4], 0  ;;  %s845_s0 = inlined_call_operand.vmem [shape: s32[3], index: 0, kind: input, shape index: {}]   ;;  %s846_s1 = inlined_call_operand.vmem [shape: f32[3], index: 1, kind: input, shape index: {}]   ;;  %s847_s2 = inlined_call_operand.vmem [shape: bf16[3,48,128], index: 2, kind: input, shape index: {}]   ;;  %s848_s3 = inlined_call_operand.vmem [shape: s32[3,48,1], index: 3, kind: input, shape index: {}]   ;;  %s849_s4 = inlined_call_operand.vmem [shape: f32[3,1,1], index: 4, kind: output, shape index: {}]  }
   0x1   :  { %10 = vsyncpa [#allocation6], 0  ;;  %s711_s15 = smov 0   ;;  %s713_s16 = smov 0  }
   0x2   :  { %s715_s17 = smov 0   ;;  %s717_s18 = smov 0  }
   0x3   :  { %s719_s19 = smov 0  }
   0x4 LB: > { %s500_s20 = sadd.s32 4294967295, %s679_s19   ;;  %s25_s21 = sadd.s32 1, %s671_s17  ;;  %s679_s19 = sphi %s719_s19, %s16_s19   ;;  %s675_s18 = sphi %s717_s18, %s863_s18   ;;  %s671_s17 = sphi %s715_s17, %s862_s17   ;;  %s667_s16 = sphi %s713_s16, %s861_s16   ;;  %s663_s15 = sphi %s711_s15, %s860_s15  }
   0x5   : > { %p26_p0 = scmp.ge.s32.totalorder %s25_s21, 3  ;;  %s28_s22 = sadd.s32 1, %s675_s18 }
   0x6   : > { %p502_p1 = scmp.ge.s32.totalorder %s679_s19, 1  ;;  %p157_p2 = scmp.lt.s32.totalorder %s679_s19, 10 }
   0x7   : > { %s865_s21 = smov (%p26_p0, %s25_s21), 0  ;;  %s867_s22 = smov (!%p26_p0, %s28_s22), %s675_s18 }
   0x8   : > { %p744_p3 = pnand %p502_p1, %p157_p2  ;;  %p30_p4 = scmp.ge.s32.totalorder %s867_s22, 3 }
   0x9   : > { %p748_p5 = scmp.eq.s32.totalorder %s500_s20, 0  ;;  %s170_s27 = sshll.u32 %s845_s0, 4  ;;  %s171_s27 = int_to_ptr.vmem [resolvable:$true] %s170_s27 }
   0xa   : > { %s853_s23 = scalar_select %p744_p3, 1, 0 }
   0xb   : > { %s854_s24 = scalar_select %p748_p5, 1, 0 }
   0xc   : > { %p535_p6 = pneg %p744_p3  ;;  %s869_s22 = smov (%p30_p4, %s867_s22), 0 }
   0xd   : > { %s181_s5 = sshll.u32 %s846_s1, 4  ;;  %s603_s6 = scalar_lea.vmem %s171_s27, 16  ;;  %s182_s5 = int_to_ptr.vmem [resolvable:$true] %s181_s5 }
   0xe   : > { %p761_p7 = pnand %p748_p5, %p535_p6  ;;  %p604_p8 = scmp.ne.s32.totalorder %s171_s27, %s603_s6 }
   0xf   : > { %p611_p12 = scmp.lt.s32.totalorder %s171_s27, %s171_s27  ;;  %p612_p13 = scmp.lt.s32.totalorder %s603_s6, %s603_s6 }
  0x10   : > { %p605_p9 = pneg %p761_p7 }
  0x11   : > { %p613_p0 = por %p612_p13, %p611_p12 }
  0x12   : > { %p606_p10 = pnand %p605_p9, %p604_p8 }
  0x14   : > { %p607_p11 = pneg %p606_p10 }
  0x16   : > { %p614_p1 = pnand %p613_p0, %p607_p11 }
  0x18   : > { %617 = shalt.err (!%p614_p1)
}
  0x19   : > { %s681_s7 = smov [#allocation3]   ;;  %s618_s8 = scalar_lea.vmem %s182_s5, 16 }
  0x1a   : > { %538 = dma.vmem_to_smem (!%p761_p7), %s171_s27, 16, %s681_s7, [#allocation4]  }
  0x1b   : > { %p619_p2 = scmp.ne.s32.totalorder %s182_s5, %s618_s8  ;;  %p626_p5 = scmp.lt.s32.totalorder %s182_s5, %s182_s5 }
  0x1c   : > { %p627_p3 = scmp.lt.s32.totalorder %s618_s8, %s618_s8 }
  0x1d   : > { %p621_p4 = pnand %p619_p2, %p605_p9 }
  0x1e   : > { %p628_p8 = por %p627_p3, %p626_p5 }
  0x1f   : > { %p622_p6 = pneg %p621_p4 }
  0x21   : > { %p629_p10 = pnand %p628_p8, %p622_p6 }
  0x23   : > { %632 = shalt.err (!%p629_p10)
}
  0x24   : > { %s682_s9 = smov [#allocation5]   ;;  %p856_p11 = scmp.ne.s32.totalorder %s853_s23, 0 }
  0x25   : > { %541 = dma.vmem_to_smem (!%p761_p7), %s182_s5, 16, %s682_s9, [#allocation6]  }
  0x26   : > { %220 = sbr.rel (%p856_p11) target bundleno = 423 (0x1a7), region = 36  ;;  %p857_p12 = scmp.ne.s32.totalorder (!%p856_p11), %s854_s24, 0 }
  0x2b   : > { %654 = dma.done.wait (%p857_p12), [#allocation4], 16  }
  0x2c   : > { %656 = vsyncadd (%p857_p12), [#allocation4], 4294967280 }
  0x2d   : > { %658 = dma.done.wait (%p857_p12), [#allocation6], 16  }
  0x2e   : > { %660 = vsyncadd (%p857_p12), [#allocation6], 4294967280 }
  0x2f   : > { %230 = sfence }
  0x30   : > { %s509_s10 = sshll.u32 %s667_s16, 1  ;;  %p263_p3 = scmp.lt.s32.totalorder %s663_s15, 2 }
  0x31   : > { %p265_p5 = scmp.lt.s32.totalorder %s509_s10, 5  ;;  %p282_p7 = scmp.lt.s32.totalorder %s667_s16, 2 }
  0x32   : > { %s264_s11 = scalar_select %p263_p3, %s663_s15, 2 }
  0x33   : > { %s871_s10 = smov (!%p265_p5, %s509_s10), 5  ;;  %s873_s16 = smov (!%p282_p7, %s667_s16), 2 }
  0x34   : > { %s524_s12 = smul.u32 6, %s264_s11  ;;  %s284_s5 = scalar_lea.vmem %s849_s4, %s873_s16 }
  0x35   : > { %p513_p9 = scmp.ne.s32.totalorder %s663_s15, 0 }
  0x36   : > { %s268_s13 = sadd.s32 %s524_s12, %s871_s10 }
  0x37   : > { %s510_s14 = sshll.u32 %s268_s13, 2  ;;  %s512_s20 = sshll.u32 %s268_s13, 3 }
  0x38   : > { %s270_s25 = scalar_lea.vmem %s847_s2, %s510_s14  ;;  %s280_s28 = scalar_lea.vmem %s848_s3, %s512_s20 }
  0x39   : > { %288 = sbr.rel (%p513_p9) target bundleno = 64 (0x40), region = 48 }
  0x3e   : > { %vm289_vm0 = vcmask 0   ;;  %v683_v0 = vmov 0.0  }
  0x3f   : > { %290 = vst.msk [vmem:[#allocation2] sm:$0x1] %vm289_vm0, %v683_v0 }
  0x40 PF: > { %s291_s6 = sld [smem:[#allocation3 + %s663_s15]]  ;;  %v299_v1 = vlaneseq  ;;  %v803_v2 = vld [vmem:[%s280_s28] sm:$0xff]  ;;  %v805_v3 = vld [vmem:[%s280_s28 + $0x8] sm:$0xff]  ;;  %v684_v5 = vmov 0   ;;  %v685_v30 = vmov 0.0   ;;  %vm372_vm10 = vcmask 7168  }
  0x41   : > { %v521_v4 = vld [vmem:[%s270_s25] sm:$0xff]   ;;  %591 = vset.pattern.permute.xlu1 %v684_v5  ;;  %592 = vset.pattern.permute.xlu0 %v684_v5  ;;  %vm329_vm1 = vcmp.gt.s32.totalorder %v803_v2, 0  ;;  %vm331_vm2 = vcmp.gt.s32.totalorder %v805_v3, 0  ;;  %vm364_vm8 = vcmp.ge.s32.totalorder %v803_v2, 0  ;;  %vm365_vm9 = vcmp.ge.s32.totalorder %v805_v3, 0  ;;  %s292_s11 = sld [smem:[#allocation5 + %s663_s15]] }
  0x42   : > { %v300_v6 = vand.u32 127, %v299_v1  ;;  %v522_v7 = vunpack.c.l.bf16 %v521_v4  ;;  %v330_v8 = vsel %vm329_vm1, %v803_v2, 0  ;;  %v332_v9 = vsel %vm331_vm2, %v805_v3, 0  ;;  %p517_p0 = scmp.ne.s32.totalorder %s663_s15, 2 }
  0x43   : > { %v523_v11 = vunpack.c.h.bf16 %v521_v4  ;;  %v515_v48 = vsel %vm364_vm8, 1.0, %v685_v30  ;;  %v516_v50 = vsel %vm365_vm9, 1.0, %v685_v30  ;;  %vm386_vm11 = vcmask 0  }
  0x46   : > { %v301_v10 = vstv %s291_s6  ;;  %s514_s7 = sadd.s32 4294967295, %s291_s6  ;;  %p325_p13 = scmp.gt.s32.totalorder %s291_s6, 1  ;;  %v382_v1 = vld [vmem:[#allocation2] sm:$0x1] }
  0x47   : > { %vm811_vm3 = vcmp.lt.s32.totalorder %v300_v6, %v301_v10  ;;  %v333_v13 = vstv %s514_s7  ;;  %v383_v63 = vstv %s292_s11 }
  0x48   : > { %v303_v14 = vsel %vm811_vm3, %v522_v7, -1e+30  ;;  %vm334_vm4 = vcmp.lt.s32.totalorder %v333_v13, %v330_v8  ;;  %vm336_vm5 = vcmp.lt.s32.totalorder %v333_v13, %v332_v9  ;;  %s875_s6 = smov (!%p325_p13, %s291_s6), 1  ;;  %v304_v16 = vsel %vm811_vm3, %v523_v11, -1e+30 }
  0x49   : > { %305 = vmax.xlane.f32.xlu0 %v303_v14  ;;  %v335_v15 = vsel %vm334_vm4, %v333_v13, %v330_v8  ;;  %s327_s8 = scvt.s32.f32 %s875_s6  ;;  %v337_v17 = vsel %vm336_vm5, %v333_v13, %v332_v9 }
  0x4a   : > { %339 = vperm.xlu1 %591, %v335_v15  }
  0x4b   : > { %v348_v18 = vstv %s327_s8 }
  0x4c   : > { %593 = vrcp.f32 %v348_v18 }
  0x4d   : > { %307 = vmax.xlane.f32.xlu0 %v304_v16 }
  0x4e   : > { %342 = vperm.xlu1 %591, %v337_v17  }
  0x59   : > { %v594_v19 = vpop.eup %593 }
  0x5a   : > { %525 = vpush %v594_v19 }
  0x8b   : > { %s526_s9 = spop %525 }
  0x8c   : > { %s351_s10 = smul.f32 0.1, %s526_s9 }
  0x8e   : > { %v352_v27 = vstv %s351_s10 }
  0x8f   : > { %v353_v29 = vsel %vm811_vm3, %v352_v27, 0.0 }
  0xc5   : > { %v340_v24 = vpop.permute.xlu1 %339 }
  0xc6   : > { %vm344_vm6 = vcmp.eq.s32.totalorder %v300_v6, %v340_v24 }
  0xc7   : > { %v346_v31 = vsel %vm344_vm6, 0.9, %v685_v30 }
  0xc8   : > { %v354_v32 = vadd.f32 %v353_v29, %v346_v31 }
  0xc9   : > { %v343_v28 = vpop.permute.xlu1 %342 }
  0xca   : > { %vm345_vm7 = vcmp.eq.s32.totalorder %v300_v6, %v343_v28  ;;  %v356_v36 = vmul.f32 %v522_v7, %v354_v32 }
  0xcb   : > { %v347_v33 = vsel %vm345_vm7, 0.9, %v685_v30 }
  0xcc   : > { %v355_v35 = vadd.f32 %v353_v29, %v347_v33 }
  0xce   : > { %v357_v38 = vmul.f32 %v523_v11, %v355_v35 }
  0xd2   : > { %v306_v20 = vpop.xlane.xlu0 %305 }
  0xd3   : > { %v309_v21 = vsub.f32 %v303_v14, %v306_v20 }
  0xd5   : > { %v311_v22 = vmul.f32 1.442695, %v309_v21 }
  0xd6   : > { %v308_v23 = vpop.xlane.xlu0 %307 }
  0xd7   : > { %595 = vpow2.f32 %v311_v22  ;;  %v310_v25 = vsub.f32 %v304_v16, %v308_v23 }
  0xd9   : > { %v313_v26 = vmul.f32 1.442695, %v310_v25 }
  0xdb   : > { %597 = vpow2.f32 %v313_v26 }
  0xe4   : > { %v596_v34 = vpop.eup %595 }
  0xe5   : > { %315 = vadd.xlane.f32.xlu0 %v596_v34 }
  0xe8   : > { %v598_v37 = vpop.eup %597 }
  0xe9   : > { %317 = vadd.xlane.f32.xlu1 %v598_v37  ;;  %358 = vadd.xlane.f32.xlu0 %v356_v36 }
  0xed   : > { %360 = vadd.xlane.f32.xlu0 %v357_v38 }
 0x16e   : > { %v316_v39 = vpop.xlane.xlu0 %315 }
 0x16f   : > { %599 = vlog2.f32 %v316_v39 }
 0x172   : > { %v318_v40 = vpop.xlane.xlu1 %317  ;;  %v359_v43 = vpop.xlane.xlu0 %358 }
 0x173   : > { %601 = vlog2.f32 %v318_v40 }
 0x176   : > { %v361_v51 = vpop.xlane.xlu0 %360 }
 0x17c   : > { %v600_v41 = vpop.eup %599 }
 0x17d   : > { %v320_v42 = vmul.f32 0.6931472, %v600_v41 }
 0x17f   : > { %v323_v44 = vadd.f32 %v320_v42, %v306_v20 }
 0x180   : > { %v602_v45 = vpop.eup %601 }
 0x181   : > { %v322_v46 = vmul.f32 0.6931472, %v602_v45  ;;  %v362_v47 = vsub.f32 %v323_v44, %v359_v43 }
 0x183   : > { %v324_v49 = vadd.f32 %v322_v46, %v308_v23  ;;  %v370_v52 = vmul.f32 %v515_v48, %v362_v47 }
 0x185   : > { %v363_v53 = vsub.f32 %v324_v49, %v361_v51  ;;  %v373_v55 = vsel %vm372_vm10, %v370_v52, 0.0 }
 0x187   : > { %v371_v54 = vmul.f32 %v516_v50, %v363_v53 }
 0x189   : > { %v374_v56 = vsel %vm372_vm10, %v371_v54, 0.0 }
 0x18a   : > { %v375_v57 = vadd.f32 %v374_v56, %v373_v55 }
 0x18c   : > { %v376_v58 = vrot.slane %v375_v57, 4 }
 0x18e   : > { %v377_v59 = vadd.f32 %v376_v58, %v375_v57 }
 0x190   : > { %v378_v60 = vrot.slane %v377_v59, 2 }
 0x192   : > { %v379_v61 = vadd.f32 %v378_v60, %v377_v59 }
 0x194   : > { %v380_v62 = vrot.slane %v379_v61, 1 }
 0x196   : > { %v381_v0 = vadd.f32 %v380_v62, %v379_v61 }
 0x198   : > { %v384_v2 = vmul.f32 %v383_v63, %v381_v0  ;;  %391 = sbr.rel (%p517_p0) target bundleno = 423 (0x1a7), region = 52 }
 0x19a   : > { %v385_v3 = vadd.f32 %v384_v2, %v382_v1 }
 0x19c   : > { %387 = vst.msk [vmem:[#allocation2] sm:$0x1] %vm386_vm11, %v385_v3 }
 0x1a3   : > { %v392_v4 = vld [vmem:[#allocation2] sm:$0x1] }
 0x1a4   : > { %v393_v5 = vmul.f32 0.025, %v392_v4 }
 0x1a6   : > { %394 = vst.msk [vmem:[%s284_s5] sm:$0x1] %vm386_vm11, %v393_v5 }
 0x1a7 PF: > { %s16_s19 = sadd.s32 1, %s679_s19   ;;  %s860_s15 = smov %s671_s17 }
 0x1a8   : > { %p13_p1 = scmp.ge.s32.totalorder %s16_s19, 11   ;;  %s861_s16 = smov %s675_s18 }
 0x1a9   : > { %s862_s17 = smov %s865_s21  ;;  %s863_s18 = smov %s869_s22 }
 0x1aa   :  { %15 = sbr.rel (!%p13_p1) target bundleno = 4 (0x4), region = 86 }
 0x1af   :  { %412 = vsyncpa [#allocation4], 1 }
 0x1b0   :  { %414 = vsyncpa [#allocation4 + $0x1], 1 }
 0x1b1   :  { %415 = vsyncpa [#allocation6], 1 }

</bundles_post_ra>
